<compile_context>
chip_gen: v5e
topology: v5e:2x2
jax: 0.10.0
libtpu: 0.0.40
codegen_flags: <defaults>
</compile_context>

<pallas_src>
import functools

import jax
import jax.numpy as jnp
from jax.experimental import pallas as pl
from jax.experimental.pallas import tpu as pltpu

SUBLANE = 8  # f32 sublane height — feature dims only ever need this much padding.


def _round_up(n, m=SUBLANE):
    return ((n + m - 1) // m) * m


def _apply_act(y, act):
    if act == "ReLU":
        return jnp.maximum(y, 0.0)
    if act == "tanh":
        return jnp.tanh(y)
    return y


# ----------------------------- Fused Pallas kernel --------------------------

def _make_fused_kernel(op_meta, n_params, n_bn, total_batch, out_dim, mm_dtype):
    """op_meta: tuple of (kind, act). Params consumed in order:
       linear -> (W, b), bn -> (gamma, beta), act -> no params.

    Grid = (n_phases, n_batch_tiles), n_phases = n_bn + 1.
      phase p < n_bn : apply BN_0..BN_{p-1} (stats ready), accumulate
                       sum / sumsq for BN_p into scratch, stop.
      phase n_bn     : apply every BN, finish the net, write the output tile.
    """
    n_phases = n_bn + 1
    inv_n = 1.0 / float(total_batch)

    def kernel(*refs):
        x_ref = refs[0]
        param_refs = refs[1:1 + n_params]
        o_ref = refs[1 + n_params]
        bn_scratch = refs[2 + n_params:]            # (sum, sumsq) per BN layer

        phase = pl.program_id(0)
        tile = pl.program_id(1)

        if bn_scratch:
            @pl.when((phase == 0) & (tile == 0))
            def _init():
                for s in bn_scratch:
                    s[...] = jnp.zeros_like(s)

        def run_phase(p):
            h = x_ref[...].astype(jnp.float32)
            pi = 0          # param cursor
            bi = 0          # BN-layer cursor
            for kind, act in op_meta:
                if kind == "linear":
                    w = param_refs[pi][...]
                    b = param_refs[pi + 1][...]
                    pi += 2
                    h = jnp.dot(h.astype(mm_dtype), w,
                                preferred_element_type=jnp.float32) + b
                elif kind == "bn":
                    g = param_refs[pi][...]
                    bt = param_refs[pi + 1][...]
                    pi += 2
                    if bi == p:
                        # Accumulate this tile's stats for BN_p and stop early
                        # (only reachable in non-final phases).
                        bn_scratch[2 * bi][...] += jnp.sum(h, axis=0,
                                                           keepdims=True)
                        bn_scratch[2 * bi + 1][...] += jnp.sum(h * h, axis=0,
                                                               keepdims=True)
                        # Deterministic placeholder; final phase overwrites it.
                        o_ref[...] = jnp.zeros_like(o_ref)
                        return
                    # bi < p: full-batch stats are ready — apply BN.
                    s = bn_scratch[2 * bi][...]
                    sq = bn_scratch[2 * bi + 1][...]
                    mean = s * inv_n
                    var = sq * inv_n - mean * mean
                    h = (h - mean) * jax.lax.rsqrt(var + 1e-5) * g + bt
                    bi += 1
                # 'act'-only steps fall through with no params.
                h = _apply_act(h, act)
            # Only the final phase reaches the end of the net.
            o_ref[...] = h[:, :out_dim].astype(o_ref.dtype)

        for p in range(n_phases):
            pl.when(phase == p)(functools.partial(run_phase, p))

    return kernel, n_phases


# ------------------------ Parameter construction ----------------------------

def build_mlp_params(layers, key):
    """Mirror get_layers(): Linear (xavier_uniform weight, torch-default bias),
    'ReLU' / 'tanh' activations, 'BN' -> BatchNorm1d (gamma=1, beta=0,
    training-mode batch stats).  Returns list of [kind, a, b, fused_act]."""
    ops = []
    last_dim = layers[0]
    for l in layers[1:]:
        if isinstance(l, int):
            key, kw, kb = jax.random.split(key, 3)
            bound = (6.0 / (last_dim + l)) ** 0.5            # xavier_uniform
            w = jax.random.uniform(kw, (last_dim, l), jnp.float32, -bound, bound)
            bb = 1.0 / (last_dim ** 0.5)                     # torch Linear bias default
            b = jax.random.uniform(kb, (l,), jnp.float32, -bb, bb)
            ops.append(["linear", w, b, None])
            last_dim = l
        elif isinstance(l, str):
            if l in ("ReLU", "tanh"):
                if ops and ops[-1][0] in ("linear", "bn") and ops[-1][3] is None:
                    ops[-1][3] = l                           # fuse into prior step
                else:
                    ops.append(["act", None, None, l])
            elif l == "BN":
                ops.append(["bn", jnp.ones((last_dim,), jnp.float32),
                            jnp.zeros((last_dim,), jnp.float32), None])
            # unknown string layers ignored, same as get_layers()
    return ops


def _prepare_params(ops, in_dim, mm_dtype):
    """Round hidden/output feature dims up to a multiple of 8 (f32 sublane)
    only — NO 128-padding of contraction dims and NO padding of x.  Zero-padded
    weight columns / bias / gamma / beta lanes keep padded features exactly 0
    through Linear, ReLU, tanh and BN.  Weights are stored in mm_dtype."""
    op_meta = []
    params = []
    bn_dims = []
    cur_p = in_dim                    # x itself is never padded
    out_dim = in_dim
    for kind, pa, pb, act in ops:
        op_meta.append((kind, act))
        if kind == "linear":
            din, dout = pa.shape
            dout_p = _round_up(dout)
            w = jnp.pad(pa, ((0, cur_p - din), (0, dout_p - dout))).astype(mm_dtype)
            b = jnp.pad(pb, (0, dout_p - dout)).reshape(1, dout_p)
            params += [w, b]
            out_dim, cur_p = dout, dout_p
        elif kind == "bn":
            d = pa.shape[0]
            g = jnp.pad(pa, (0, cur_p - d)).reshape(1, cur_p)
            bt = jnp.pad(pb, (0, cur_p - d)).reshape(1, cur_p)
            params += [g, bt]
            bn_dims.append(cur_p)
        # 'act' has no params
    return tuple(op_meta), params, len(bn_dims), bn_dims, out_dim


def _pick_batch_tile(batch, max_tile=512):
    if batch <= max_tile:
        return batch
    for tb in range(max_tile, 0, -1):
        if batch % tb == 0 and tb % SUBLANE == 0:
            return tb
    return batch   # e.g. prime batch: one whole-batch tile


# ----------------------------- Fused forward --------------------------------

def make_mlp_forward(ops, in_dim, *, matmul_dtype=jnp.float32, batch_tile=None):
    op_meta, params, n_bn, bn_dims, out_dim = _prepare_params(ops, in_dim,
                                                              matmul_dtype)

    @jax.jit
    def forward(x, *ps):
        B, D = x.shape
        assert D == in_dim
        tb = batch_tile if (batch_tile is not None and B % batch_tile == 0) \
            else _pick_batch_tile(B)
        n_tiles = B // tb

        kernel, n_phases = _make_fused_kernel(op_meta, len(ps), n_bn, B,
                                              out_dim, matmul_dtype)

        in_specs = [pl.BlockSpec((tb, in_dim), lambda p, i: (i, 0))]
        # Weights/biases/gamma/beta: full-array blocks, constant index_map
        # -> DMA'd once, VMEM-resident for the whole grid.
        in_specs += [pl.BlockSpec(prm.shape, lambda p, i: (0, 0)) for prm in ps]
        out_spec = pl.BlockSpec((tb, out_dim), lambda p, i: (i, 0))

        scratch = []
        for d in bn_dims:
            scratch += [pltpu.VMEM((1, d), jnp.float32),    # sum
                        pltpu.VMEM((1, d), jnp.float32)]    # sum of squares

        # VMEM budget: double-buffered x/out tiles + resident params + scratch.
        param_bytes = sum(prm.size * prm.dtype.itemsize for prm in ps)
        tile_bytes = 4 * tb * (in_dim + out_dim)
        est = 2 * (param_bytes + tile_bytes) + 8 * sum(bn_dims) + (1 << 20)
        vmem_limit = int(min(max(4 * est, 16 << 20), 48 << 20))

        # Advisory cost estimate (includes phase-prefix recompute upper bound).
        flops = 0
        transcendentals = 0
        pi = 0
        d = in_dim
        for kind, act in op_meta:
            if kind == "linear":
                din, dout = ps[pi].shape
                pi += 2
                flops += 2 * B * din * dout + B * dout
                d = dout
            elif kind == "bn":
                pi += 2
                flops += 8 * B * d
                transcendentals += d
            if act == "tanh":
                transcendentals += B * d
            elif act == "ReLU":
                flops += B * d
        ce = pl.CostEstimate(
            flops=int(flops * n_phases),
            transcendentals=int(transcendentals * n_phases),
            bytes_accessed=int(4 * B * (in_dim + out_dim) + param_bytes))

        # BN adds a cross-tile stats reduction -> both axes 'arbitrary'.
        semantics = ("arbitrary", "arbitrary" if n_bn else "parallel")

        return pl.pallas_call(
            kernel,
            out_shape=jax.ShapeDtypeStruct((B, out_dim), jnp.float32),
            grid=(n_phases, n_tiles),
            in_specs=in_specs,
            out_specs=out_spec,
            scratch_shapes=scratch,
            compiler_params=pltpu.CompilerParams(
                dimension_semantics=semantics,
                vmem_limit_bytes=vmem_limit),
            cost_estimate=ce,
        )(x, *ps)

    return lambda x: forward(x, *params)


# ------------------------------ Pure-JAX ref ---------------------------------

def mlp_reference(x, ops, matmul_dtype=jnp.float32):
    h = x
    for kind, pa, pb, act in ops:
        if kind == "linear":
            h = jnp.dot(h.astype(matmul_dtype), pa.astype(matmul_dtype),
                        preferred_element_type=jnp.float32) + pb
        elif kind == "bn":
            mean = jnp.mean(h, axis=0, keepdims=True)
            var = jnp.mean((h - mean) ** 2, axis=0, keepdims=True)
            h = (h - mean) * jax.lax.rsqrt(var + 1e-5) * pa + pb
        if act == "ReLU":
            h = jnp.maximum(h, 0.0)
        elif act == "tanh":
            h = jnp.tanh(h)
    return h


# ---------------------------------- main -------------------------------------

if __name__ == "__main__":
    # MLP([32, 64, 'ReLU', 64, 'BN', 'tanh', 16])
    layer_spec = [32, 64, "ReLU", 64, "BN", "tanh", 16]

    key = jax.random.PRNGKey(0)
    key, kp, kx = jax.random.split(key, 3)
    ops = build_mlp_params(layer_spec, kp)

    batch = 32
    x = jax.random.normal(kx, (batch, layer_spec[0]), dtype=jnp.float32)

    # f32 MXU path, batch tiled 4x8 -> exercises the cross-tile BN reduction.
    fwd_f32 = make_mlp_forward(ops, layer_spec[0],
                               matmul_dtype=jnp.float32, batch_tile=8)
    out = jax.block_until_ready(fwd_f32(x))
    ref = mlp_reference(x, ops, matmul_dtype=jnp.float32)
    assert out.shape == (batch, layer_spec[-1])
    assert jnp.allclose(out, ref, atol=1e-4, rtol=1e-4), \
        "f32 kernel mismatch vs pure-JAX reference"

    # bf16 MXU path (v6e/v7x fast path); BN / activations stay f32.
    fwd_bf16 = make_mlp_forward(ops, layer_spec[0],
                                matmul_dtype=jnp.bfloat16, batch_tile=8)
    out_bf = jax.block_until_ready(fwd_bf16(x))
    ref_bf = mlp_reference(x, ops, matmul_dtype=jnp.bfloat16)
    assert jnp.allclose(out_bf, ref_bf, atol=2e-3, rtol=2e-3), \
        "bf16 kernel mismatch vs bf16 pure-JAX reference"

    print("KERNEL_OK")
</pallas_src>

<mosaic_0001>
module attributes {stable_mosaic.version = 11 : i64} {
  func.func @kernel(%arg0: i32, %arg1: i32, %arg2: memref<8x32xf32, #tpu.memory_space<vmem>>, %arg3: memref<32x64xf32, #tpu.memory_space<vmem>>, %arg4: memref<1x64xf32, #tpu.memory_space<vmem>>, %arg5: memref<64x64xf32, #tpu.memory_space<vmem>>, %arg6: memref<1x64xf32, #tpu.memory_space<vmem>>, %arg7: memref<1x64xf32, #tpu.memory_space<vmem>>, %arg8: memref<1x64xf32, #tpu.memory_space<vmem>>, %arg9: memref<64x16xf32, #tpu.memory_space<vmem>>, %arg10: memref<1x16xf32, #tpu.memory_space<vmem>>, %arg11: memref<8x16xf32, #tpu.memory_space<vmem>>, %arg12: memref<1x64xf32, #tpu.memory_space<vmem>>, %arg13: memref<1x64xf32, #tpu.memory_space<vmem>>) attributes {dimension_semantics = [#tpu.dimension_semantics<arbitrary>, #tpu.dimension_semantics<arbitrary>], iteration_bounds = array<i64: 2, 4>, scalar_prefetch = 0 : i64, scratch_operands = 2 : i64, tpu.core_type = #tpu.core_type<tc>, window_params = [{transform_indices = @transform_0, window_bounds = array<i64: 8, 32>}, {pipeline_mode = #tpu.pipeline_mode<synchronous>, transform_indices = @transform_1, window_bounds = array<i64: 32, 64>}, {pipeline_mode = #tpu.pipeline_mode<synchronous>, transform_indices = @transform_2, window_bounds = array<i64: 1, 64>}, {pipeline_mode = #tpu.pipeline_mode<synchronous>, transform_indices = @transform_3, window_bounds = array<i64: 64, 64>}, {pipeline_mode = #tpu.pipeline_mode<synchronous>, transform_indices = @transform_4, window_bounds = array<i64: 1, 64>}, {pipeline_mode = #tpu.pipeline_mode<synchronous>, transform_indices = @transform_5, window_bounds = array<i64: 1, 64>}, {pipeline_mode = #tpu.pipeline_mode<synchronous>, transform_indices = @transform_6, window_bounds = array<i64: 1, 64>}, {pipeline_mode = #tpu.pipeline_mode<synchronous>, transform_indices = @transform_7, window_bounds = array<i64: 64, 16>}, {pipeline_mode = #tpu.pipeline_mode<synchronous>, transform_indices = @transform_8, window_bounds = array<i64: 1, 16>}, {transform_indices = @transform_9, window_bounds = array<i64: 8, 16>}]} {
    %c0_i32 = arith.constant 0 : i32
    %0 = arith.cmpi eq, %arg0, %c0_i32 : i32
    %c0_i32_0 = arith.constant 0 : i32
    %1 = arith.cmpi eq, %arg1, %c0_i32_0 : i32
    %2 = arith.andi %0, %1 : i1
    %3 = arith.extui %2 : i1 to i32
    %c0_i32_1 = arith.constant 0 : i32
    %4 = arith.cmpi ne, %3, %c0_i32_1 : i32
    scf.if %4 {
      %cst = arith.constant 0.000000e+00 : f32
      %11 = vector.broadcast %cst : f32 to vector<1x64xf32>
      %c0 = arith.constant 0 : index
      %c0_5 = arith.constant 0 : index
      %12 = vector.load %arg12[%c0, %c0_5] : memref<1x64xf32, #tpu.memory_space<vmem>>, vector<1x64xf32>
      tpu.vector_store %arg12[%c0, %c0_5], %11 {strides = array<i32>} : memref<1x64xf32, #tpu.memory_space<vmem>>, vector<1x64xf32>,
      %cst_6 = arith.constant 0.000000e+00 : f32
      %13 = vector.broadcast %cst_6 : f32 to vector<1x64xf32>
      %c0_7 = arith.constant 0 : index
      %c0_8 = arith.constant 0 : index
      %14 = vector.load %arg13[%c0_7, %c0_8] : memref<1x64xf32, #tpu.memory_space<vmem>>, vector<1x64xf32>
      tpu.vector_store %arg13[%c0_7, %c0_8], %13 {strides = array<i32>} : memref<1x64xf32, #tpu.memory_space<vmem>>, vector<1x64xf32>,
    } else {
    }
    %c0_i32_2 = arith.constant 0 : i32
    %5 = arith.cmpi eq, %arg0, %c0_i32_2 : i32
    %6 = arith.extui %5 : i1 to i32
    %c0_i32_3 = arith.constant 0 : i32
    %7 = arith.cmpi ne, %6, %c0_i32_3 : i32
    scf.if %7 {
      %c0 = arith.constant 0 : index
      %c0_5 = arith.constant 0 : index
      %11 = vector.load %arg2[%c0, %c0_5] : memref<8x32xf32, #tpu.memory_space<vmem>>, vector<8x32xf32>
      %c0_6 = arith.constant 0 : index
      %c0_7 = arith.constant 0 : index
      %12 = vector.load %arg3[%c0_6, %c0_7] : memref<32x64xf32, #tpu.memory_space<vmem>>, vector<32x64xf32>
      %c0_8 = arith.constant 0 : index
      %c0_9 = arith.constant 0 : index
      %13 = vector.load %arg4[%c0_8, %c0_9] : memref<1x64xf32, #tpu.memory_space<vmem>>, vector<1x64xf32>
      %cst = arith.constant dense<0.000000e+00> : vector<8x64xf32>
      %14 = tpu.matmul %11, %12, %cst {dimension_numbers = #tpu.dot_dimension_numbers<[1], [0], [0], [1], [0, 0, 1, 1], [], []>} : vector<8x32xf32>, vector<32x64xf32>, vector<8x64xf32> -> vector<8x64xf32>
      %15 = vector.broadcast %13 : vector<1x64xf32> to vector<8x64xf32>
      %16 = arith.addf %14, %15 : vector<8x64xf32>
      %cst_10 = arith.constant 0.000000e+00 : f32
      %17 = vector.broadcast %cst_10 : f32 to vector<8x64xf32>
      %18 = arith.maximumf %16, %17 : vector<8x64xf32>
      %c0_11 = arith.constant 0 : index
      %c0_12 = arith.constant 0 : index
      %19 = vector.load %arg5[%c0_11, %c0_12] : memref<64x64xf32, #tpu.memory_space<vmem>>, vector<64x64xf32>
      %c0_13 = arith.constant 0 : index
      %c0_14 = arith.constant 0 : index
      %20 = vector.load %arg6[%c0_13, %c0_14] : memref<1x64xf32, #tpu.memory_space<vmem>>, vector<1x64xf32>
      %cst_15 = arith.constant dense<0.000000e+00> : vector<8x64xf32>
      %21 = tpu.matmul %18, %19, %cst_15 {dimension_numbers = #tpu.dot_dimension_numbers<[1], [0], [0], [1], [0, 0, 1, 1], [], []>} : vector<8x64xf32>, vector<64x64xf32>, vector<8x64xf32> -> vector<8x64xf32>
      %22 = vector.broadcast %20 : vector<1x64xf32> to vector<8x64xf32>
      %23 = arith.addf %21, %22 : vector<8x64xf32>
      %c0_16 = arith.constant 0 : index
      %c0_17 = arith.constant 0 : index
      %24 = vector.load %arg12[%c0_16, %c0_17] : memref<1x64xf32, #tpu.memory_space<vmem>>, vector<1x64xf32>
      %cst_18 = arith.constant dense<0.000000e+00> : vector<64xf32>
      %25 = vector.multi_reduction <add>, %23, %cst_18 [0] : vector<8x64xf32> to vector<64xf32>
      %26 = vector.shape_cast %25 : vector<64xf32> to vector<1x64xf32>
      %27 = arith.addf %24, %26 : vector<1x64xf32>
      %c0_19 = arith.constant 0 : index
      %c0_20 = arith.constant 0 : index
      %28 = vector.load %arg12[%c0_19, %c0_20] : memref<1x64xf32, #tpu.memory_space<vmem>>, vector<1x64xf32>
      tpu.vector_store %arg12[%c0_19, %c0_20], %27 {strides = array<i32>} : memref<1x64xf32, #tpu.memory_space<vmem>>, vector<1x64xf32>,
      %c0_21 = arith.constant 0 : index
      %c0_22 = arith.constant 0 : index
      %29 = vector.load %arg13[%c0_21, %c0_22] : memref<1x64xf32, #tpu.memory_space<vmem>>, vector<1x64xf32>
      %30 = arith.mulf %23, %23 : vector<8x64xf32>
      %cst_23 = arith.constant dense<0.000000e+00> : vector<64xf32>
      %31 = vector.multi_reduction <add>, %30, %cst_23 [0] : vector<8x64xf32> to vector<64xf32>
      %32 = vector.shape_cast %31 : vector<64xf32> to vector<1x64xf32>
      %33 = arith.addf %29, %32 : vector<1x64xf32>
      %c0_24 = arith.constant 0 : index
      %c0_25 = arith.constant 0 : index
      %34 = vector.load %arg13[%c0_24, %c0_25] : memref<1x64xf32, #tpu.memory_space<vmem>>, vector<1x64xf32>
      tpu.vector_store %arg13[%c0_24, %c0_25], %33 {strides = array<i32>} : memref<1x64xf32, #tpu.memory_space<vmem>>, vector<1x64xf32>,
      %cst_26 = arith.constant 0.000000e+00 : f32
      %35 = vector.broadcast %cst_26 : f32 to vector<8x16xf32>
      %c0_27 = arith.constant 0 : index
      %c0_28 = arith.constant 0 : index
      %36 = vector.load %arg11[%c0_27, %c0_28] : memref<8x16xf32, #tpu.memory_space<vmem>>, vector<8x16xf32>
      tpu.vector_store %arg11[%c0_27, %c0_28], %35 {strides = array<i32>} : memref<8x16xf32, #tpu.memory_space<vmem>>, vector<8x16xf32>,
    } else {
    }
    %c1_i32 = arith.constant 1 : i32
    %8 = arith.cmpi eq, %arg0, %c1_i32 : i32
    %9 = arith.extui %8 : i1 to i32
    %c0_i32_4 = arith.constant 0 : i32
    %10 = arith.cmpi ne, %9, %c0_i32_4 : i32
    scf.if %10 {
      %c0 = arith.constant 0 : index
      %c0_5 = arith.constant 0 : index
      %11 = vector.load %arg2[%c0, %c0_5] : memref<8x32xf32, #tpu.memory_space<vmem>>, vector<8x32xf32>
      %c0_6 = arith.constant 0 : index
      %c0_7 = arith.constant 0 : index
      %12 = vector.load %arg3[%c0_6, %c0_7] : memref<32x64xf32, #tpu.memory_space<vmem>>, vector<32x64xf32>
      %c0_8 = arith.constant 0 : index
      %c0_9 = arith.constant 0 : index
      %13 = vector.load %arg4[%c0_8, %c0_9] : memref<1x64xf32, #tpu.memory_space<vmem>>, vector<1x64xf32>
      %cst = arith.constant dense<0.000000e+00> : vector<8x64xf32>
      %14 = tpu.matmul %11, %12, %cst {dimension_numbers = #tpu.dot_dimension_numbers<[1], [0], [0], [1], [0, 0, 1, 1], [], []>} : vector<8x32xf32>, vector<32x64xf32>, vector<8x64xf32> -> vector<8x64xf32>
      %15 = vector.broadcast %13 : vector<1x64xf32> to vector<8x64xf32>
      %16 = arith.addf %14, %15 : vector<8x64xf32>
      %cst_10 = arith.constant 0.000000e+00 : f32
      %17 = vector.broadcast %cst_10 : f32 to vector<8x64xf32>
      %18 = arith.maximumf %16, %17 : vector<8x64xf32>
      %c0_11 = arith.constant 0 : index
      %c0_12 = arith.constant 0 : index
      %19 = vector.load %arg5[%c0_11, %c0_12] : memref<64x64xf32, #tpu.memory_space<vmem>>, vector<64x64xf32>
      %c0_13 = arith.constant 0 : index
      %c0_14 = arith.constant 0 : index
      %20 = vector.load %arg6[%c0_13, %c0_14] : memref<1x64xf32, #tpu.memory_space<vmem>>, vector<1x64xf32>
      %cst_15 = arith.constant dense<0.000000e+00> : vector<8x64xf32>
      %21 = tpu.matmul %18, %19, %cst_15 {dimension_numbers = #tpu.dot_dimension_numbers<[1], [0], [0], [1], [0, 0, 1, 1], [], []>} : vector<8x64xf32>, vector<64x64xf32>, vector<8x64xf32> -> vector<8x64xf32>
      %22 = vector.broadcast %20 : vector<1x64xf32> to vector<8x64xf32>
      %23 = arith.addf %21, %22 : vector<8x64xf32>
      %c0_16 = arith.constant 0 : index
      %c0_17 = arith.constant 0 : index
      %24 = vector.load %arg7[%c0_16, %c0_17] : memref<1x64xf32, #tpu.memory_space<vmem>>, vector<1x64xf32>
      %c0_18 = arith.constant 0 : index
      %c0_19 = arith.constant 0 : index
      %25 = vector.load %arg8[%c0_18, %c0_19] : memref<1x64xf32, #tpu.memory_space<vmem>>, vector<1x64xf32>
      %c0_20 = arith.constant 0 : index
      %c0_21 = arith.constant 0 : index
      %26 = vector.load %arg12[%c0_20, %c0_21] : memref<1x64xf32, #tpu.memory_space<vmem>>, vector<1x64xf32>
      %c0_22 = arith.constant 0 : index
      %c0_23 = arith.constant 0 : index
      %27 = vector.load %arg13[%c0_22, %c0_23] : memref<1x64xf32, #tpu.memory_space<vmem>>, vector<1x64xf32>
      %cst_24 = arith.constant 3.125000e-02 : f32
      %28 = vector.broadcast %cst_24 : f32 to vector<1x64xf32>
      %29 = arith.mulf %26, %28 : vector<1x64xf32>
      %cst_25 = arith.constant 3.125000e-02 : f32
      %30 = vector.broadcast %cst_25 : f32 to vector<1x64xf32>
      %31 = arith.mulf %27, %30 : vector<1x64xf32>
      %32 = arith.mulf %29, %29 : vector<1x64xf32>
      %33 = arith.subf %31, %32 : vector<1x64xf32>
      %34 = vector.broadcast %29 : vector<1x64xf32> to vector<8x64xf32>
      %35 = arith.subf %23, %34 : vector<8x64xf32>
      %cst_26 = arith.constant 9.99999974E-6 : f32
      %36 = vector.broadcast %cst_26 : f32 to vector<1x64xf32>
      %37 = arith.addf %33, %36 : vector<1x64xf32>
      %38 = math.rsqrt %37 : vector<1x64xf32>
      %39 = vector.broadcast %38 : vector<1x64xf32> to vector<8x64xf32>
      %40 = arith.mulf %35, %39 : vector<8x64xf32>
      %41 = vector.broadcast %24 : vector<1x64xf32> to vector<8x64xf32>
      %42 = arith.mulf %40, %41 : vector<8x64xf32>
      %43 = vector.broadcast %25 : vector<1x64xf32> to vector<8x64xf32>
      %44 = arith.addf %42, %43 : vector<8x64xf32>
      %45 = math.tanh %44 : vector<8x64xf32>
      %c0_27 = arith.constant 0 : index
      %c0_28 = arith.constant 0 : index
      %46 = vector.load %arg9[%c0_27, %c0_28] : memref<64x16xf32, #tpu.memory_space<vmem>>, vector<64x16xf32>
      %c0_29 = arith.constant 0 : index
      %c0_30 = arith.constant 0 : index
      %47 = vector.load %arg10[%c0_29, %c0_30] : memref<1x16xf32, #tpu.memory_space<vmem>>, vector<1x16xf32>
      %cst_31 = arith.constant dense<0.000000e+00> : vector<8x16xf32>
      %48 = tpu.matmul %45, %46, %cst_31 {dimension_numbers = #tpu.dot_dimension_numbers<[1], [0], [0], [1], [0, 0, 1, 1], [], []>} : vector<8x64xf32>, vector<64x16xf32>, vector<8x16xf32> -> vector<8x16xf32>
      %49 = vector.broadcast %47 : vector<1x16xf32> to vector<8x16xf32>
      %50 = arith.addf %48, %49 : vector<8x16xf32>
      %c0_32 = arith.constant 0 : index
      %c0_33 = arith.constant 0 : index
      %51 = vector.load %arg11[%c0_32, %c0_33] : memref<8x16xf32, #tpu.memory_space<vmem>>, vector<8x16xf32>
      tpu.vector_store %arg11[%c0_32, %c0_33], %50 {strides = array<i32>} : memref<8x16xf32, #tpu.memory_space<vmem>>, vector<8x16xf32>,
    } else {
    }
    return
  }
  func.func @transform_0(%arg0: i32, %arg1: i32) -> (i32, i32) {
    %c0_i32 = arith.constant 0 : i32
    %c0_i32_0 = arith.constant 0 : i32
    return %arg1, %c0_i32 : i32, i32
  }
  func.func @transform_1(%arg0: i32, %arg1: i32) -> (i32, i32) {
    %c0_i32 = arith.constant 0 : i32
    %c0_i32_0 = arith.constant 0 : i32
    %c0_i32_1 = arith.constant 0 : i32
    return %c0_i32, %c0_i32_0 : i32, i32
  }
  func.func @transform_2(%arg0: i32, %arg1: i32) -> (i32, i32) {
    %c0_i32 = arith.constant 0 : i32
    %c0_i32_0 = arith.constant 0 : i32
    %c0_i32_1 = arith.constant 0 : i32
    return %c0_i32, %c0_i32_0 : i32, i32
  }
  func.func @transform_3(%arg0: i32, %arg1: i32) -> (i32, i32) {
    %c0_i32 = arith.constant 0 : i32
    %c0_i32_0 = arith.constant 0 : i32
    %c0_i32_1 = arith.constant 0 : i32
    return %c0_i32, %c0_i32_0 : i32, i32
  }
  func.func @transform_4(%arg0: i32, %arg1: i32) -> (i32, i32) {
    %c0_i32 = arith.constant 0 : i32
    %c0_i32_0 = arith.constant 0 : i32
    %c0_i32_1 = arith.constant 0 : i32
    return %c0_i32, %c0_i32_0 : i32, i32
  }
  func.func @transform_5(%arg0: i32, %arg1: i32) -> (i32, i32) {
    %c0_i32 = arith.constant 0 : i32
    %c0_i32_0 = arith.constant 0 : i32
    %c0_i32_1 = arith.constant 0 : i32
    return %c0_i32, %c0_i32_0 : i32, i32
  }
  func.func @transform_6(%arg0: i32, %arg1: i32) -> (i32, i32) {
    %c0_i32 = arith.constant 0 : i32
    %c0_i32_0 = arith.constant 0 : i32
    %c0_i32_1 = arith.constant 0 : i32
    return %c0_i32, %c0_i32_0 : i32, i32
  }
  func.func @transform_7(%arg0: i32, %arg1: i32) -> (i32, i32) {
    %c0_i32 = arith.constant 0 : i32
    %c0_i32_0 = arith.constant 0 : i32
    %c0_i32_1 = arith.constant 0 : i32
    return %c0_i32, %c0_i32_0 : i32, i32
  }
  func.func @transform_8(%arg0: i32, %arg1: i32) -> (i32, i32) {
    %c0_i32 = arith.constant 0 : i32
    %c0_i32_0 = arith.constant 0 : i32
    %c0_i32_1 = arith.constant 0 : i32
    return %c0_i32, %c0_i32_0 : i32, i32
  }
  func.func @transform_9(%arg0: i32, %arg1: i32) -> (i32, i32) {
    %c0_i32 = arith.constant 0 : i32
    %c0_i32_0 = arith.constant 0 : i32
    return %arg1, %c0_i32 : i32, i32
  }
}

</mosaic_0001>

<bundles_post_ra>
// kernel: forward.1
= control target key start
LH: loop header
LB: loop body
LE: loop exit
PB: predicated region body
PF: predicated region fallthrough
CT: control target
= control target key end

     0   :  { %s1260_s0 = inlined_call_operand.hbm [shape: f32[32,32], index: 0, kind: input, shape index: {}]   ;;  %s1261_s1 = inlined_call_operand.hbm [shape: f32[32,64], index: 1, kind: input, shape index: {}]   ;;  %s1262_s2 = inlined_call_operand.vmem [shape: f32[1,64], index: 2, kind: input, shape index: {}]   ;;  %s1263_s3 = inlined_call_operand.vmem [shape: f32[64,64], index: 3, kind: input, shape index: {}]   ;;  %s1264_s4 = inlined_call_operand.vmem [shape: f32[1,64], index: 4, kind: input, shape index: {}]   ;;  %s1265_s5 = inlined_call_operand.vmem [shape: f32[1,64], index: 5, kind: input, shape index: {}]   ;;  %s1266_s6 = inlined_call_operand.vmem [shape: f32[1,64], index: 6, kind: input, shape index: {}]   ;;  %s1267_s7 = inlined_call_operand.vmem [shape: f32[64,16], index: 7, kind: input, shape index: {}]   ;;  %s1268_s8 = inlined_call_operand.vmem [shape: f32[1,16], index: 8, kind: input, shape index: {}]   ;;  %s1269_s9 = inlined_call_operand.vmem [shape: f32[32,16], index: 9, kind: output, shape index: {}]  }
   0x1   :  { %1273 = sst [smem:[#allocation14_spill]] %s1261_s1 }
   0x2   :  { %14 = vsyncpa [#allocation5], 0 }
   0x3   :  { %16 = vsyncpa [#allocation5 + $0x1], 0 }
   0x4   :  { %17 = vsyncpa [#allocation7], 0  ;;  %s1022_s30 = smov 0   ;;  %s1024_s10 = smov 0  }
   0x5   :  { %s1026_s11 = smov 0   ;;  %s1028_s12 = smov 0  }
   0x6   :  { %s1030_s13 = smov 0   ;;  %s1032_s14 = smov 0  }
   0x7   :  { %s1034_s15 = smov 0   ;;  %s1036_s16 = smov 0  }
   0x8 LB: > { %1274 = sst [smem:[#allocation10_spill]] %s957_s14  ;;  %s718_s17 = sadd.s32 4294967295, %s965_s16   ;;  %s965_s16 = sphi %s1036_s16, %s23_s16   ;;  %s961_s15 = sphi %s1034_s15, %s1285_s15   ;;  %s957_s14 = sphi %s1032_s14, %s1284_s14   ;;  %s953_s13 = sphi %s1030_s13, %s1283_s13   ;;  %s949_s12 = sphi %s1028_s12, %s1282_s12   ;;  %s945_s11 = sphi %s1026_s11, %s1288_s11   ;;  %s941_s10 = sphi %s1024_s10, %s1287_s10   ;;  %s937_s30 = sphi %s1022_s30, %s1286_s30  }
   0x9   : > { %1275 = sst [smem:[#allocation11_spill]] %s961_s15  ;;  %p720_p0 = scmp.ge.s32.totalorder %s965_s16, 1 }
   0xa   : > { %p1064_p1 = scmp.eq.s32.totalorder %s718_s17, 0  ;;  %p260_p2 = scmp.lt.s32.totalorder %s965_s16, 9 }
   0xb   : > { %s1277_s1 = sld [smem:[#allocation14_spill]]  ;;  %s967_s23 = smov [#allocation6]  }
   0xc   : > { %p1072_p3 = pnand %p720_p0, %p260_p2  ;;  %s273_s24 = sshll.u32 %s967_s23, 4  ;;  %s274_s24 = int_to_ptr.vmem [resolvable:$true] %s273_s24 }
   0xd   : > { %s968_s25 = smov 128   ;;  %s969_s26 = smov 8  }
   0xe   : > { %p744_p4 = pneg %p1072_p3  ;;  %s32_s27 = sadd.s32 1, %s957_s14 }
   0xf   : > { %p33_p6 = scmp.ge.s32.totalorder %s32_s27, 4  ;;  %s35_s28 = sadd.s32 1, %s961_s15 }
  0x10   : > { %p745_p5 = pnand %p744_p4, %p1064_p1  ;;  %s42_s29 = sadd.s32 1, %s945_s11 }
  0x11   : > { %s271_s21 = sshll.u32 %s1277_s1, 4  ;;  %p49_p7 = scmp.ne.s32.totalorder %s945_s11, %s941_s10  ;;  %s272_s21 = int_to_ptr.hbm [resolvable:$true] %s271_s21 }
  0x12   : > { %747 = dma.hbm_to_vmem [thread:$0]  (!%p745_p5), %s272_s21, 512, %s274_s24, [#allocation7], %s968_s25, %s968_s25, %s969_s26  }
  0x13   : > { %s1290_s27 = smov (%p33_p6, %s32_s27), 0  ;;  %s1292_s28 = smov (!%p33_p6, %s35_s28), %s961_s15 }
  0x14   : > { %1279 = sst [smem:[#allocation12_spill]] %s1290_s27  ;;  %s39_s17 = ssub.s32 %s957_s14, %s1290_s27 }
  0x15   : > { %p50_p8 = scmp.eq.s32.totalorder %s965_s16, 0  ;;  %p37_p9 = scmp.ge.s32.totalorder %s1292_s28, 2 }
  0x16   : > { %p40_p10 = scmp.eq.s32.totalorder %s39_s17, 0  ;;  %p55_p11 = scmp.ne.s32.totalorder %s941_s10, %s937_s30 }
  0x17   : > { %s1294_s28 = smov (%p37_p9, %s1292_s28), 0  ;;  %p51_p12 = por %p50_p8, %p49_p7 }
  0x18   : > { %1280 = sst [smem:[#allocation13_spill]] %s1294_s28  ;;  %p1100_p13 = por %p1064_p1, %p55_p11 }
  0x19   : > { %s1096_s19 = scalar_select %p40_p10, %s945_s11, %s42_s29  }
  0x1a   : > { %s308_s21 = sand.u32 1, %s945_s11   ;;  %s724_s23 = sshll.u32 %s957_s14, 3 }
  0x1b   : > { %p753_p0 = scmp.lt.s32.totalorder %s965_s16, 8  ;;  %s723_s24 = sshll.u32 %s308_s21, 3 }
  0x1c   : > { %s316_s1 = scalar_lea.hbm %s1260_s0, %s724_s23  ;;  %s312_s30 = scalar_lea.vmem [#allocation4], %s723_s24 }
  0x1d   : > { %s318_s17 = sshll.u32 %s316_s1, 4  ;;  %s320_s27 = sshll.u32 %s312_s30, 4  ;;  %s319_s17 = int_to_ptr.hbm [resolvable:$true] %s318_s17  ;;  %s321_s27 = int_to_ptr.vmem [resolvable:$true] %s320_s27 }
  0x1e   : > { %p749_p2 = pnand %p753_p0, %p51_p12  ;;  %s309_s29 = scalar_lea.sflag [#allocation5], %s308_s21 }
  0x1f   : > { %329 = sbr.rel (%p1072_p3) target bundleno = 766 (0x2fe), region = 56  ;;  %s331_s28 = sand.u32 (!%p1072_p3), 1, %s941_s10  }
  0x20   : > { %751 = dma.hbm_to_vmem [thread:$0]  (!%p749_p2), %s319_s17, 128, %s321_s27, %s309_s29  }
  0x21   : > { %s1113_s15 = sshll.u32 (!%p1072_p3), %s331_s28, 3  ;;  %s332_s14 = scalar_lea.sflag (!%p1072_p3), [#allocation5], %s331_s28 }
  0x22   : > { %s335_s25 = scalar_lea.vmem (!%p1072_p3), [#allocation4], %s1113_s15 }
  0x24   : > { %928 = dma.done.wait (%p1100_p13), %s332_s14, 128  }
  0x25   : > { %930 = vsyncadd (%p1100_p13), %s332_s14, 4294967168 }
  0x26   : > { %932 = dma.done.wait (%p1064_p1), [#allocation7], 512  }
  0x27   : > { %934 = vsyncadd (%p1064_p1), [#allocation7], 4294966784  ;;  %p375_p3 = scmp.lt.s32.totalorder %s949_s12, 3  ;;  %p379_p4 = scmp.eq.s32.totalorder %s953_s13, 0 }
  0x28   : > { %p380_p5 = scmp.eq.s32.totalorder %s949_s12, 0 }
  0x29   : > { %s1296_s12 = smov (!%p375_p3, %s949_s12), 3 }
  0x2a   : > { %p381_p6 = pnand %p380_p5, %p379_p4  ;;  %s728_s1 = sshll.u32 %s1296_s12, 3 }
  0x2b   : > { %s1131_s14 = scalar_lea.vmem %s1269_s9, %s728_s1 }
  0x2c   : > { %384 = sbr.rel (%p381_p6) target bundleno = 52 (0x34), region = 68 }
  0x31   : > { %vm385_vm0 = vcmask 516096   ;;  %v970_v0 = vmov 0.0  }
  0x32   : > { %386 = vst.msk [vmem:[#allocation2] sm:$0x1] %vm385_vm0, %v970_v0 }
  0x33   : > { %387 = vst.msk [vmem:[#allocation3] sm:$0x1] %vm385_vm0, %v970_v0 }
  0x34 PF: > { %p729_p1 = scmp.ne.s32.totalorder %s953_s13, 0 }
  0x36   : > { %390 = sbr.rel (%p729_p1) target bundleno = 343 (0x157), region = 72 }
  0x3b   : > { %v395_v1 = vld [vmem:[#allocation6 + $0x18] sm:$0xff]  ;;  %v394_v2 = vld [vmem:[#allocation6 + $0x10] sm:$0xff]  ;;  %v432_v3 = vld [vmem:[%s1263_s3 + $0x38] sm:$0xff]  ;;  %vm400_vm1 = vcmask 261120   ;;  %vm437_vm2 = vcmask 523264   ;;  %vm483_vm3 = vcmask 130048  }
  0x3c   : > { %416 = vmatpush.msra.mxu0 %v395_v1  ;;  %v393_v4 = vld [vmem:[#allocation6 + $0x8] sm:$0xff]  ;;  %449 = vmatpush.msra.mxu1 %v432_v3  ;;  %v431_v5 = vld [vmem:[%s1263_s3 + $0x30] sm:$0xff]  ;;  %v430_v6 = vld [vmem:[%s1263_s3 + $0x28] sm:$0xff]  ;;  %v971_v18 = vmov 0.0   ;;  %vm470_vm4 = vcmask 516096  }
  0x3d   : > { %v392_v7 = vld [vmem:[#allocation6] sm:$0xff]  ;;  %v391_v8 = vld [vmem:[%s335_s25] sm:$0xff]  ;;  %v824_v14 = vld [vmem:[%s1262_s2] ss:$0 sm:$0xff]  ;;  %484 = vst.msk [vmem:[%s1131_s14] sm:$0xff] %vm483_vm3, %v971_v18 }
  0x3e   : > { %417 = vmatpush.msra.mxu0 %v394_v2  ;;  %450 = vmatpush.msra.mxu1 %v431_v5  ;;  %v429_v9 = vld [vmem:[%s1263_s3 + $0x20] sm:$0xff]  ;;  %v428_v10 = vld [vmem:[%s1263_s3 + $0x18] sm:$0xff]  ;;  %v427_v11 = vld [vmem:[%s1263_s3 + $0x10] sm:$0xff] }
  0x3f   : > { %v426_v12 = vld [vmem:[%s1263_s3 + $0x8] sm:$0xff]  ;;  %v425_v13 = vld [vmem:[%s1263_s3] sm:$0xff] }
  0x40   : > { %418 = vmatpush.msra.mxu0 %v393_v4  ;;  %451 = vmatpush.msra.mxu1 %v430_v6  ;;  %v825_v19 = vld [vmem:[%s1264_s4] ss:$0 sm:$0xff]  ;;  %v472_v37 = vld [vmem:[#allocation3] sm:$0x1] }
  0x41   : > { %v461_v34 = vld [vmem:[#allocation2] sm:$0x1] }
  0x42   : > { %419 = vmatpush.msra.mxu0 %v392_v7  ;;  %452 = vmatpush.msra.mxu1 %v429_v9 }
  0x43   : > { %730 = vmatmul.msk.f32.vlgmr.msra.gmra.mxu0 %vm400_vm1, %v391_v8 }
  0x44   : > { %453 = vmatpush.msra.mxu1 %v428_v10 }
  0x46   : > { %454 = vmatpush.msra.mxu1 %v427_v11 }
  0x48   : > { %455 = vmatpush.msra.mxu1 %v426_v12 }
  0x4a   : > { %456 = vmatpush.msra.mxu1 %v425_v13 }
  0xc0   : > { %v421_v15 = vpop.f32.mrf.mxu0 }
  0xc1   : > { %v422_v16 = vadd.f32 %v824_v14, %v421_v15 }
  0xc3   : > { %v424_v17 = vmax.f32 %v422_v16, 0.0 }
  0xc5   : > { %731 = vmatmul.msk.f32.vlgmr.msra.gmra.mxu1 %vm437_vm2, %v424_v17 }
 0x142   : > { %v458_v20 = vpop.f32.mrf.mxu1 }
 0x143   : > { %v459_v21 = vadd.f32 %v825_v19, %v458_v20 }
 0x145   : > { %v462_v22 = vsel %vm437_vm2, %v459_v21, 0.0  ;;  %v473_v23 = vmul.f32 %v459_v21, %v459_v21 }
 0x146   : > { %v463_v24 = vrot.slane %v462_v22, 4 }
 0x147   : > { %v474_v25 = vsel %vm437_vm2, %v473_v23, 0.0 }
 0x148   : > { %v464_v26 = vadd.f32 %v463_v24, %v462_v22  ;;  %v475_v27 = vrot.slane %v474_v25, 4 }
 0x14a   : > { %v465_v28 = vrot.slane %v464_v26, 2  ;;  %v476_v29 = vadd.f32 %v475_v27, %v474_v25 }
 0x14c   : > { %v466_v30 = vadd.f32 %v465_v28, %v464_v26  ;;  %v477_v31 = vrot.slane %v476_v29, 2 }
 0x14e   : > { %v467_v32 = vrot.slane %v466_v30, 1  ;;  %v478_v33 = vadd.f32 %v477_v31, %v476_v29 }
 0x150   : > { %v468_v35 = vadd.f32 %v467_v32, %v466_v30  ;;  %v479_v36 = vrot.slane %v478_v33, 1 }
 0x152   : > { %v469_v38 = vadd.f32 %v468_v35, %v461_v34  ;;  %v480_v39 = vadd.f32 %v479_v36, %v478_v33 }
 0x154   : > { %471 = vst.msk [vmem:[#allocation2] sm:$0x1] %vm470_vm4, %v469_v38  ;;  %v481_v40 = vadd.f32 %v480_v39, %v472_v37 }
 0x156   : > { %482 = vst.msk [vmem:[#allocation3] sm:$0x1] %vm470_vm4, %v481_v40 }
 0x157 PF: > { %p732_p7 = scmp.ne.s32.totalorder %s953_s13, 1 }
 0x159   : > { %488 = sbr.rel (%p732_p7) target bundleno = 766 (0x2fe), region = 76 }
 0x15e   : > { %v493_v41 = vld [vmem:[#allocation6 + $0x18] sm:$0xff]  ;;  %v492_v42 = vld [vmem:[#allocation6 + $0x10] sm:$0xff]  ;;  %v530_v43 = vld [vmem:[%s1263_s3 + $0x38] sm:$0xff]  ;;  %vm498_vm5 = vcmask 261120   ;;  %vm535_vm6 = vcmask 523264   ;;  %vm630_vm10 = vcmask 130048  }
 0x15f   : > { %514 = vmatpush.msra.mxu0 %v493_v41  ;;  %v491_v44 = vld [vmem:[#allocation6 + $0x8] sm:$0xff]  ;;  %547 = vmatpush.msra.mxu1 %v530_v43  ;;  %v529_v45 = vld [vmem:[%s1263_s3 + $0x30] sm:$0xff]  ;;  %v528_v47 = vld [vmem:[%s1263_s3 + $0x28] sm:$0xff] }
 0x160   : > { %v490_v46 = vld [vmem:[#allocation6] sm:$0xff]  ;;  %v489_v48 = vld [vmem:[%s335_s25] sm:$0xff]  ;;  %v826_v54 = vld [vmem:[%s1262_s2] ss:$0 sm:$0xff] }
 0x161   : > { %515 = vmatpush.msra.mxu0 %v492_v42  ;;  %548 = vmatpush.msra.mxu1 %v529_v45  ;;  %v527_v49 = vld [vmem:[%s1263_s3 + $0x20] sm:$0xff]  ;;  %v526_v50 = vld [vmem:[%s1263_s3 + $0x18] sm:$0xff]  ;;  %v525_v51 = vld [vmem:[%s1263_s3 + $0x10] sm:$0xff] }
 0x162   : > { %v524_v52 = vld [vmem:[%s1263_s3 + $0x8] sm:$0xff]  ;;  %v523_v53 = vld [vmem:[%s1263_s3] sm:$0xff]  ;;  %v602_v1 = vld [vmem:[%s1267_s7 + $0x38] sm:$0xff] }
 0x163   : > { %516 = vmatpush.msra.mxu0 %v491_v44  ;;  %549 = vmatpush.msra.mxu1 %v528_v47  ;;  %v561_v58 = vld [vmem:[#allocation2] sm:$0x1]  ;;  %v562_v60 = vld [vmem:[#allocation3] sm:$0x1]  ;;  %v601_v2 = vld [vmem:[%s1267_s7 + $0x30] sm:$0xff] }
 0x164   : > { %v563_v59 = vmul.f32 0.03125, %v561_v58  ;;  %v564_v61 = vmul.f32 0.03125, %v562_v60  ;;  %618 = vmatpush.msra.mxu2 %v602_v1  ;;  %v600_v3 = vld [vmem:[%s1267_s7 + $0x28] sm:$0xff]  ;;  %v599_v5 = vld [vmem:[%s1267_s7 + $0x20] sm:$0xff]  ;;  %v598_v7 = vld [vmem:[%s1267_s7 + $0x18] sm:$0xff] }
 0x165   : > { %517 = vmatpush.msra.mxu0 %v490_v46  ;;  %550 = vmatpush.msra.mxu1 %v527_v49  ;;  %v597_v8 = vld [vmem:[%s1267_s7 + $0x10] sm:$0xff]  ;;  %v596_v9 = vld [vmem:[%s1267_s7 + $0x8] sm:$0xff]  ;;  %v595_v11 = vld [vmem:[%s1267_s7] sm:$0xff] }
 0x166   : > { %733 = vmatmul.msk.f32.vlgmr.msra.gmra.mxu0 %vm498_vm5, %v489_v48  ;;  %v565_v62 = vmul.f32 %v563_v59, %v563_v59  ;;  %619 = vmatpush.msra.mxu2 %v601_v2  ;;  %v827_v15 = vld [vmem:[%s1264_s4] ss:$0 sm:$0xff]  ;;  %v568_v17 = vperm.slane %v563_v59, 0 }
 0x167   : > { %551 = vmatpush.msra.mxu1 %v526_v50  ;;  %v828_v22 = vld [vmem:[%s1265_s5] ss:$0 sm:$0xff] }
 0x168   : > { %v566_v63 = vsub.f32 %v564_v61, %v565_v62  ;;  %620 = vmatpush.msra.mxu2 %v600_v3  ;;  %v829_v24 = vld [vmem:[%s1266_s6] ss:$0 sm:$0xff] }
 0x169   : > { %552 = vmatpush.msra.mxu1 %v525_v51  ;;  %v830_v28 = vld [vmem:[%s1268_s8] ss:$0 sm:$0xff] }
 0x16a   : > { %v571_v0 = vadd.f32 1e-05, %v566_v63  ;;  %621 = vmatpush.msra.mxu2 %v599_v5 }
 0x16b   : > { %553 = vmatpush.msra.mxu1 %v524_v52 }
 0x16c   : > { %831 = vrsqrt.f32 %v571_v0  ;;  %622 = vmatpush.msra.mxu2 %v598_v7  ;;  %vm578_vm7 = vweird.f32 %v571_v0 }
 0x16d   : > { %554 = vmatpush.msra.mxu1 %v523_v53 }
 0x16e   : > { %623 = vmatpush.msra.mxu2 %v597_v8 }
 0x170   : > { %624 = vmatpush.msra.mxu2 %v596_v9 }
 0x172   : > { %v832_v4 = vpop.eup %831  ;;  %625 = vmatpush.msra.mxu2 %v595_v11 }
 0x173   : > { %v573_v6 = vmul.f32 %v832_v4, %v571_v0  ;;  %vm579_vm8 = vweird.f32 %v832_v4 }
 0x174   : > { %vm580_vm9 = vmor %vm578_vm7, %vm579_vm8 }
 0x175   : > { %v574_v10 = vmul.f32 %v832_v4, %v573_v6 }
 0x177   : > { %v575_v12 = vmul.f32 0.5, %v574_v10 }
 0x179   : > { %v576_v13 = vsub.f32 1.5, %v575_v12 }
 0x17b   : > { %v577_v14 = vmul.f32 %v832_v4, %v576_v13 }
 0x17d   : > { %v581_v16 = vsel %vm580_vm9, %v832_v4, %v577_v14 }
 0x17e   : > { %v583_v20 = vperm.slane %v581_v16, 0 }
 0x1e3   : > { %v519_v55 = vpop.f32.mrf.mxu0 }
 0x1e4   : > { %v520_v56 = vadd.f32 %v826_v54, %v519_v55 }
 0x1e6   : > { %v522_v57 = vmax.f32 %v520_v56, 0.0 }
 0x1e8   : > { %734 = vmatmul.msk.f32.vlgmr.msra.gmra.mxu1 %vm535_vm6, %v522_v57 }
 0x265   : > { %v556_v18 = vpop.f32.mrf.mxu1 }
 0x266   : > { %v557_v19 = vadd.f32 %v827_v15, %v556_v18 }
 0x268   : > { %v570_v21 = vsub.f32 %v557_v19, %v568_v17 }
 0x26a   : > { %v585_v23 = vmul.f32 %v583_v20, %v570_v21 }
 0x26c   : > { %v589_v25 = vmul.f32 %v828_v22, %v585_v23 }
 0x26e   : > { %v593_v26 = vadd.f32 %v829_v24, %v589_v25 }
 0x270   : > { %833 = vtanh.f32 %v593_v26 }
 0x276   : > { %v834_v27 = vpop.eup %833 }
 0x277   : > { %735 = vmatmul.msk.f32.vlgmr.msra.gmra.mxu2 %vm535_vm6, %v834_v27 }
 0x2fa   : > { %v627_v29 = vpop.f32.mrf.mxu2 }
 0x2fb   : > { %v628_v30 = vadd.f32 %v830_v28, %v627_v29 }
 0x2fd   : > { %631 = vst.msk [vmem:[%s1131_s14] sm:$0xff] %vm630_vm10, %v628_v30 }
 0x2fe PF: > { %s23_s16 = sadd.s32 1, %s965_s16   ;;  %s1282_s12 = sld [smem:[#allocation10_spill]] }
 0x2ff   : > { %p20_p8 = scmp.ge.s32.totalorder %s23_s16, 10   ;;  %s1283_s13 = sld [smem:[#allocation11_spill]] }
 0x300   : > { %s1284_s14 = sld [smem:[#allocation12_spill]]  ;;  %s1286_s30 = smov %s941_s10 }
 0x301   : > { %s1285_s15 = sld [smem:[#allocation13_spill]]  ;;  %s1287_s10 = smov %s945_s11 }
 0x302   : > { %s1288_s11 = smov %s1096_s19  ;;  %22 = sbr.rel (!%p20_p8) target bundleno = 8 (0x8), region = 112 }
 0x307   :  { %651 = vsyncpa [#allocation5], 1 }
 0x308   :  { %653 = vsyncpa [#allocation5 + $0x1], 1 }
 0x309   :  { %654 = vsyncpa [#allocation7], 1 }

</bundles_post_ra>
